<compile_context>
chip_gen: v7x
topology: tpu7x:2x2x1
jax: 0.10.0
libtpu: 0.0.40
codegen_flags: <defaults>
</compile_context>

<pallas_src>
import jax
import jax.numpy as jnp
from jax.experimental import pallas as pl
from jax.experimental.pallas import tpu as pltpu

# Only split the copy into multiple DMAs when the tensor is large enough that the
# extra per-DMA issue overhead is negligible relative to the transfer time.
_SPLIT_THRESHOLD_BYTES = 4 * 1024 * 1024
_MAX_CHUNKS = 4


def _dma_copy(x):
    """Direct HBM->HBM DMA copy of `x` (any shape, any dtype), returned as a new array."""
    shape = x.shape
    nbytes = x.size * jnp.dtype(x.dtype).itemsize
    lead = shape[0] if len(shape) >= 1 else 1

    # Static (Python-level) chunking along the leading axis.
    if nbytes >= _SPLIT_THRESHOLD_BYTES and lead >= 2:
        n_chunks = min(_MAX_CHUNKS, lead)
        base, rem = divmod(lead, n_chunks)
        bounds = []
        start = 0
        for c in range(n_chunks):
            size = base + (1 if c < rem else 0)
            bounds.append((start, size))
            start += size
        bounds = tuple(bounds)
    else:
        n_chunks = 1
        bounds = None

    if bounds is None:
        def kernel(x_hbm, o_hbm, sem):
            cp = pltpu.make_async_copy(x_hbm, o_hbm, sem)
            cp.start()
            cp.wait()

        sem_shape = pltpu.SemaphoreType.DMA(())
    else:
        def kernel(x_hbm, o_hbm, sems):
            copies = []
            for idx, (start, size) in enumerate(bounds):
                cp = pltpu.make_async_copy(
                    x_hbm.at[pl.ds(start, size)],
                    o_hbm.at[pl.ds(start, size)],
                    sems.at[idx],
                )
                cp.start()
                copies.append(cp)
            for cp in copies:
                cp.wait()

        sem_shape = pltpu.SemaphoreType.DMA((n_chunks,))

    return pl.pallas_call(
        kernel,
        out_shape=jax.ShapeDtypeStruct(shape, x.dtype),
        in_specs=[pl.BlockSpec(memory_space=pl.ANY)],
        out_specs=pl.BlockSpec(memory_space=pl.ANY),
        scratch_shapes=[sem_shape],
        cost_estimate=pl.CostEstimate(
            flops=0,
            transcendentals=0,
            bytes_accessed=2 * nbytes,
        ),
    )(x)


@jax.jit
def identity_forward(x):
    """Pallas implementation of Identity.forward(x) -> x (same shape, same dtype)."""
    if x.size == 0:
        return x
    orig_shape = x.shape
    if x.ndim == 0:
        # DMA a 1-element view; reshape is metadata only.
        return _dma_copy(x.reshape(1)).reshape(orig_shape)
    return _dma_copy(x)


if __name__ == "__main__":
    key = jax.random.PRNGKey(0)
    # Small NCHW-style input consistent with typical conv-model usage.
    x = jax.random.normal(key, (2, 4, 16, 16), dtype=jnp.float32)

    y = identity_forward(x)
    jax.block_until_ready(y)

    assert y.shape == x.shape, (y.shape, x.shape)
    assert y.dtype == x.dtype, (y.dtype, x.dtype)
    assert bool(jnp.all(y == x)), "Identity output mismatch"

    print("KERNEL_OK")
</pallas_src>

<mosaic_0001>
module attributes {stable_mosaic.version = 11 : i64} {
  func.func @kernel(%arg0: memref<2x4x16x16xf32, #tpu.memory_space<any>>, %arg1: memref<2x4x16x16xf32, #tpu.memory_space<any>>, %arg2: memref<!tpu.dma_semaphore, #tpu.memory_space<semaphore_mem>>) attributes {dimension_semantics = [], scalar_prefetch = 0 : i64, scratch_operands = 1 : i64, tpu.core_type = #tpu.core_type<tc>} {
    tpu.enqueue_dma source(%arg0 : memref<2x4x16x16xf32, #tpu.memory_space<any>>) target(%arg1 : memref<2x4x16x16xf32, #tpu.memory_space<any>>) target_semaphore(%arg2 : memref<!tpu.dma_semaphore, #tpu.memory_space<semaphore_mem>>)
    tpu.wait_dma2 semaphore(%arg2 : memref<!tpu.dma_semaphore, #tpu.memory_space<semaphore_mem>>) src(%arg0 : memref<2x4x16x16xf32, #tpu.memory_space<any>>) dst(%arg1 : memref<2x4x16x16xf32, #tpu.memory_space<any>>)
    return
  }
}

</mosaic_0001>

<bundles_post_ra>
// kernel: identity_forward.1
= control target key start
LH: loop header
LB: loop body
LE: loop exit
PB: predicated region body
PF: predicated region fallthrough
CT: control target
= control target key end

     0   :  { %s36_s6 = smov [#allocation2]   ;;  %s37_s7 = smov [#allocation3]   ;;  %s55_s0 = inlined_call_operand.hbm [shape: f32[2,4,16,16], index: 0, kind: input, shape index: {}]   ;;  %s56_s1 = inlined_call_operand.hbm [shape: f32[2,4,16,16], index: 1, kind: output, shape index: {}]  }
   0x1   :  { %s38_s8 = smov 0  }
   0x2   :  { %18 = dma.general %s55_s0, 2048, %s56_s1, %s36_s6, %s37_s7, [#allocation4], %s38_s8, 0  }
   0x3   :  { %34 = dma.done.wait [#allocation2], 2048 }
   0x4   :  { %35 = vsyncadd [#allocation2], 4294965248 }
   0x5   :  { %24 = vsyncmov [#allocation2] }
   0x8   :  { %s25_s13 = vpop.sfrf %24 }
   0x9   :  { %p30_p0 = scmp.ne.s32.totalorder %s25_s13, 0 }
   0xb   :  { %29 = shalt.err (%p30_p0)  }

</bundles_post_ra>
